<compile_context>
chip_gen: v5e
topology: v5e:2x2
jax: 0.10.0
libtpu: 0.0.40
codegen_flags: <defaults>
</compile_context>

<pallas_src>
import functools
import math

import jax
import jax.numpy as jnp
from jax import lax
from jax.experimental import pallas as pl
from jax.experimental.pallas import tpu as pltpu


def _round_up(v, m):
    return ((v + m - 1) // m) * m


def _step_vmem_bytes(bt, in_dim, out_pad, out_store):
    """Conservative per-grid-step VMEM estimate (f32, double buffers + temps)."""
    x_bytes = 2 * bt * in_dim * 4            # x tile, double buffered
    o_bytes = 2 * bt * out_store * 4         # output tile, double buffered
    wc_bytes = 2 * in_dim * out_pad * 4      # resident combined weight
    tmp_bytes = (bt * in_dim + bt * out_pad + 2 * bt * out_store) * 4
    return x_bytes + o_bytes + wc_bytes + tmp_bytes


# --------------------------------------------------------------------------
# Main batched NALU kernel: one batch tile per grid step.
#   wc = [ W | G | 0-pad ]   (in_dim, out_pad), grid-invariant -> VMEM resident
# --------------------------------------------------------------------------
def nalu_main_kernel(x_ref, wc_ref, o_ref, *, out_dim, out_store):
    out_pad = wc_ref.shape[1]
    x = x_ref[...].astype(jnp.float32)                        # (bt, in_dim)
    wc = wc_ref[...]                                          # (in_dim, out_pad)

    # Additive path: the gate column rides the same MXU matmul as x @ W.
    a_full = jnp.dot(x, wc, preferred_element_type=jnp.float32)   # (bt, out_pad)

    # Multiplicative path only needs the first out_store (lane-aligned) columns.
    logx = jnp.log(jnp.abs(x) + 1e-8)
    wc_m = wc if out_store == out_pad else wc[:, :out_store]
    lm = jnp.dot(logx, wc_m, preferred_element_type=jnp.float32)  # (bt, out_store)

    # Gate: extract the (x @ G) column via a masked lane reduction (XLU),
    # then sigmoid (EUP) and broadcast in the mix.
    col = lax.broadcasted_iota(jnp.int32, a_full.shape, dimension=1)
    g_lin = jnp.sum(jnp.where(col == out_dim, a_full, 0.0), axis=1, keepdims=True)
    g = jax.nn.sigmoid(g_lin)                                 # (bt, 1)

    # Epilogue on the lane-dense output slice only.
    a = a_full if out_store == out_pad else a_full[:, :out_store]
    m = jnp.exp(lm)
    # y = g*a + (1-g)*m  ==  m + g*(a - m)
    o_ref[...] = (m + g * (a - m)).astype(o_ref.dtype)


# --------------------------------------------------------------------------
# Wrapper
# --------------------------------------------------------------------------
def nalu_forward(x, w_hat, m_hat, g_param, *, batch_tile=512):
    B, in_dim = x.shape
    in_dim_w, out_dim = w_hat.shape
    assert in_dim_w == in_dim and m_hat.shape == w_hat.shape
    assert g_param.shape == (in_dim, 1)

    out_store = _round_up(out_dim, 128)        # output width (lane-dense write)
    out_pad = _round_up(out_dim + 1, 128)      # weight width (incl. gate column)

    # ---- Parameter transform in plain XLA: one fused elementwise pass, no
    #      full-weight Pallas call and no extra pad round-trips. ----
    w = jnp.tanh(w_hat).astype(jnp.float32) * jax.nn.sigmoid(m_hat).astype(jnp.float32)
    wc = jnp.concatenate(
        [w, g_param.astype(jnp.float32),
         jnp.zeros((in_dim, out_pad - out_dim - 1), jnp.float32)],
        axis=1)                                               # (in_dim, out_pad)

    # ---- Batch tiling: VMEM-budget aware, minimal over-padding. ----
    try:
        vmem_cap = int(pltpu.get_tpu_info().vmem_capacity_bytes)
    except Exception:
        vmem_cap = 64 * 1024 * 1024            # safe fallback (v7x-sized)
    budget = (vmem_cap * 3) // 4               # ~25% headroom

    num_tiles = max(1, pl.cdiv(B, batch_tile))
    if num_tiles == 1 and B >= 256:
        num_tiles = 2                          # keep both v7x TensorCores busy
    while True:
        bt = _round_up(pl.cdiv(B, num_tiles), 8)
        if _step_vmem_bytes(bt, in_dim, out_pad, out_store) <= budget or bt <= 8:
            break
        num_tiles += 1
    B_pad = num_tiles * bt

    needed = _step_vmem_bytes(bt, in_dim, out_pad, out_store)
    vmem_limit = int(min(vmem_cap, max(needed, budget, 32 * 1024 * 1024)))

    # Pad the batch with 1.0 rows: log(|1|+eps) ~ 0, so discarded rows stay
    # finite (no inf from exp) -- they are sliced off below.
    x_p = x if B_pad == B else jnp.pad(x, ((0, B_pad - B), (0, 0)),
                                       constant_values=1.0)

    flops = 2 * B_pad * in_dim * (out_pad + out_store)
    transcendentals = B_pad * in_dim + B_pad * out_store + 2 * B_pad
    bytes_accessed = 4 * (B_pad * in_dim + in_dim * out_pad + B_pad * out_store)

    y_pad = pl.pallas_call(
        functools.partial(nalu_main_kernel, out_dim=out_dim, out_store=out_store),
        out_shape=jax.ShapeDtypeStruct((B_pad, out_store), jnp.float32),
        grid=(num_tiles,),
        in_specs=[
            # x: tiled over batch, full in_dim.
            pl.BlockSpec((bt, in_dim), lambda i: (i, 0)),
            # combined weight: grid-invariant, stays resident in VMEM.
            pl.BlockSpec((in_dim, out_pad), lambda i: (0, 0)),
        ],
        out_specs=pl.BlockSpec((bt, out_store), lambda i: (i, 0)),
        compiler_params=pltpu.CompilerParams(
            dimension_semantics=("parallel",),
            vmem_limit_bytes=vmem_limit,
        ),
        cost_estimate=pl.CostEstimate(
            flops=flops,
            transcendentals=transcendentals,
            bytes_accessed=bytes_accessed,
        ),
    )(x_p, wc)

    # Trim only what is actually padded (no-op slices are skipped entirely).
    if B_pad == B and out_store == out_dim:
        return y_pad
    if out_store == out_dim:
        return y_pad[:B]
    return y_pad[:B, :out_dim]


# --------------------------------------------------------------------------
# Reference / test harness
# --------------------------------------------------------------------------
def xavier_uniform(key, shape):
    # Matches torch.nn.init.xavier_uniform_ for 2-D tensors (fan_in, fan_out).
    fan_in, fan_out = shape
    bound = math.sqrt(6.0 / (fan_in + fan_out))
    return jax.random.uniform(key, shape, jnp.float32, -bound, bound)


def nalu_reference(x, w_hat, m_hat, g_param):
    W = jnp.tanh(w_hat) * jax.nn.sigmoid(m_hat)
    g = jax.nn.sigmoid(x @ g_param)
    a = x @ W
    m = jnp.exp(jnp.log(jnp.abs(x) + 1e-8) @ W)
    return g * a + (1.0 - g) * m


if __name__ == "__main__":
    B, in_dim, out_dim = 16, 32, 64

    key = jax.random.PRNGKey(0)
    k_x, k_g, k_w, k_m = jax.random.split(key, 4)

    x = jax.random.normal(k_x, (B, in_dim), jnp.float32)
    G = xavier_uniform(k_g, (in_dim, 1))
    W_hat = xavier_uniform(k_w, (in_dim, out_dim))
    M_hat = xavier_uniform(k_m, (in_dim, out_dim))

    y = nalu_forward(x, W_hat, M_hat, G)
    y = jax.block_until_ready(y)

    y_ref = nalu_reference(x, W_hat, M_hat, G)
    assert y.shape == (B, out_dim)
    assert jnp.allclose(y, y_ref, atol=2e-5, rtol=2e-5), "mismatch vs reference"

    print("KERNEL_OK")
</pallas_src>

<mosaic_0001>
module attributes {stable_mosaic.version = 11 : i64} {
  func.func @nalu_main_kernel(%arg0: i32, %arg1: memref<16x32xf32, #tpu.memory_space<vmem>>, %arg2: memref<32x128xf32, #tpu.memory_space<vmem>>, %arg3: memref<16x128xf32, #tpu.memory_space<vmem>>) attributes {dimension_semantics = [#tpu.dimension_semantics<parallel>], iteration_bounds = array<i64: 1>, scalar_prefetch = 0 : i64, scratch_operands = 0 : i64, tpu.core_type = #tpu.core_type<tc>, window_params = [{transform_indices = @transform_0, window_bounds = array<i64: 16, 32>}, {pipeline_mode = #tpu.pipeline_mode<synchronous>, transform_indices = @transform_1, window_bounds = array<i64: 32, 128>}, {transform_indices = @transform_2, window_bounds = array<i64: 16, 128>}]} {
    %c0 = arith.constant 0 : index
    %c0_0 = arith.constant 0 : index
    %0 = vector.load %arg1[%c0, %c0_0] : memref<16x32xf32, #tpu.memory_space<vmem>>, vector<16x32xf32>
    %c0_1 = arith.constant 0 : index
    %c0_2 = arith.constant 0 : index
    %1 = vector.load %arg2[%c0_1, %c0_2] : memref<32x128xf32, #tpu.memory_space<vmem>>, vector<32x128xf32>
    %cst = arith.constant dense<0.000000e+00> : vector<16x128xf32>
    %2 = tpu.matmul %0, %1, %cst {dimension_numbers = #tpu.dot_dimension_numbers<[1], [0], [0], [1], [0, 0, 1, 1], [], []>} : vector<16x32xf32>, vector<32x128xf32>, vector<16x128xf32> -> vector<16x128xf32>
    %3 = math.absf %0 : vector<16x32xf32>
    %cst_3 = arith.constant 9.99999993E-9 : f32
    %4 = vector.broadcast %cst_3 : f32 to vector<16x32xf32>
    %5 = arith.addf %3, %4 : vector<16x32xf32>
    %6 = math.log %5 : vector<16x32xf32>
    %cst_4 = arith.constant dense<0.000000e+00> : vector<16x128xf32>
    %7 = tpu.matmul %6, %1, %cst_4 {dimension_numbers = #tpu.dot_dimension_numbers<[1], [0], [0], [1], [0, 0, 1, 1], [], []>} : vector<16x32xf32>, vector<32x128xf32>, vector<16x128xf32> -> vector<16x128xf32>
    %8 = tpu.iota {dimensions = array<i32: 1>} : vector<16x128xi32>
    %c64_i32 = arith.constant 64 : i32
    %9 = vector.broadcast %c64_i32 : i32 to vector<16x128xi32>
    %10 = arith.cmpi eq, %8, %9 : vector<16x128xi32>
    %cst_5 = arith.constant 0.000000e+00 : f32
    %11 = vector.broadcast %cst_5 : f32 to vector<16x128xf32>
    %12 = arith.select %10, %2, %11 : vector<16x128xi1>, vector<16x128xf32>
    %cst_6 = arith.constant dense<0.000000e+00> : vector<16xf32>
    %13 = vector.multi_reduction <add>, %12, %cst_6 [1] : vector<16x128xf32> to vector<16xf32>
    %14 = vector.shape_cast %13 : vector<16xf32> to vector<16x1xf32>
    %15 = arith.negf %14 : vector<16x1xf32>
    %16 = math.exp %15 : vector<16x1xf32>
    %cst_7 = arith.constant 1.000000e+00 : f32
    %17 = vector.broadcast %cst_7 : f32 to vector<16x1xf32>
    %18 = arith.addf %17, %16 : vector<16x1xf32>
    %19 = arith.divf %17, %18 : vector<16x1xf32>
    %20 = math.exp %7 : vector<16x128xf32>
    %21 = arith.subf %2, %20 : vector<16x128xf32>
    %22 = vector.broadcast %19 : vector<16x1xf32> to vector<16x128xf32>
    %23 = arith.mulf %22, %21 : vector<16x128xf32>
    %24 = arith.addf %20, %23 : vector<16x128xf32>
    %c0_8 = arith.constant 0 : index
    %c0_9 = arith.constant 0 : index
    %25 = vector.load %arg3[%c0_8, %c0_9] : memref<16x128xf32, #tpu.memory_space<vmem>>, vector<16x128xf32>
    tpu.vector_store %arg3[%c0_8, %c0_9], %24 {strides = array<i32>} : memref<16x128xf32, #tpu.memory_space<vmem>>, vector<16x128xf32>,
    return
  }
  func.func @transform_0(%arg0: i32) -> (i32, i32) {
    %c0_i32 = arith.constant 0 : i32
    %c0_i32_0 = arith.constant 0 : i32
    return %arg0, %c0_i32 : i32, i32
  }
  func.func @transform_1(%arg0: i32) -> (i32, i32) {
    %c0_i32 = arith.constant 0 : i32
    %c0_i32_0 = arith.constant 0 : i32
    %c0_i32_1 = arith.constant 0 : i32
    return %c0_i32, %c0_i32_0 : i32, i32
  }
  func.func @transform_2(%arg0: i32) -> (i32, i32) {
    %c0_i32 = arith.constant 0 : i32
    %c0_i32_0 = arith.constant 0 : i32
    return %arg0, %c0_i32 : i32, i32
  }
}

</mosaic_0001>

<bundles_post_ra>
// kernel: tpu_custom_call.1
= control target key start
LH: loop header
LB: loop body
LE: loop exit
PB: predicated region body
PF: predicated region fallthrough
CT: control target
= control target key end

     0   :  { %7 = vsyncpa [#allocation3], 0  ;;  %s351_s0 = inlined_call_operand.hbm [shape: f32[16,32], index: 0, kind: input, shape index: {}]   ;;  %s352_s1 = inlined_call_operand.hbm [shape: f32[32,128], index: 1, kind: input, shape index: {}]   ;;  %s353_s2 = inlined_call_operand.hbm [shape: f32[16,128], index: 2, kind: output, shape index: {}]  }
   0x1   :  { %8 = vsyncpa [#allocation6], 0 }
   0x2   :  { %9 = vsyncpa [#allocation4], 0  ;;  %s14_s11 = sshll.u32 %s351_s0, 4  ;;  %s309_s12 = smov [#allocation2]   ;;  %s15_s11 = int_to_ptr.hbm [resolvable:$true] %s14_s11 }
   0x3   :  { %s16_s13 = sshll.u32 %s309_s12, 4  ;;  %s27_s16 = sshll.u32 %s352_s1, 4  ;;  %s17_s13 = int_to_ptr.vmem [resolvable:$true] %s16_s13  ;;  %s28_s16 = int_to_ptr.hbm [resolvable:$true] %s27_s16 }
   0x4   :  { %s310_s17 = smov 128   ;;  %s311_s18 = smov 8  }
   0x5   :  { %22 = dma.hbm_to_vmem [thread:$0]  %s15_s11, 256, %s17_s13, [#allocation3], %s310_s17, %s310_s17, %s311_s18  }
   0x6   :  { %s312_s19 = smov [#allocation5]  }
   0x7   :  { %s29_s20 = sshll.u32 %s312_s19, 4  ;;  %s30_s20 = int_to_ptr.vmem [resolvable:$true] %s29_s20 }
   0x8   :  { %35 = dma.hbm_to_vmem [thread:$0]  %s28_s16, 512, %s30_s20, [#allocation6], %s310_s17, %s310_s17, %s311_s18  }
   0x9   :  { %303 = dma.done.wait [#allocation3], 256  }
   0xa   :  { %304 = vsyncadd [#allocation3], 4294967040 }
   0xb   :  { %305 = dma.done.wait [#allocation6], 512  }
   0xc   :  { %306 = vsyncadd [#allocation6], 4294966784  ;;  %v49_v0 = vld [vmem:[#allocation5 + $0x18] sm:$0xff]  ;;  %v48_v1 = vld [vmem:[#allocation5 + $0x10] sm:$0xff]  ;;  %vm50_vm0 = vcmask 261120   ;;  %v117_v14 = vlaneseq  ;;  %s313_s0 = smov [#allocation7]  }
   0xd   :  { %69 = vmatpush.msra.mxu0 %v49_v0  ;;  %202 = vmatpush.msra.mxu2 %v49_v0  ;;  %v44_v2 = vld [vmem:[#allocation2] sm:$0xff]  ;;  %v45_v3 = vld [vmem:[#allocation2 + $0x8] sm:$0xff]  ;;  %v47_v4 = vld [vmem:[#allocation5 + $0x8] sm:$0xff]  ;;  %s180_s1 = sshll.u32 %s313_s0, 4  ;;  %s182_s23 = sshll.u32 %s353_s2, 4  ;;  %s181_s1 = int_to_ptr.vmem [resolvable:$true] %s180_s1  ;;  %s183_s23 = int_to_ptr.hbm [resolvable:$true] %s182_s23 }
   0xe   :  { %106 = vmatpush.msra.mxu1 %v49_v0  ;;  %206 = vmatpush.msra.mxu3 %v49_v0  ;;  %v80_v5 = vand.u32 2147483647, %v44_v2  ;;  %v81_v6 = vand.u32 2147483647, %v45_v3  ;;  %v46_v7 = vld [vmem:[#allocation5] sm:$0xff]  ;;  %v118_v15 = vand.u32 127, %v117_v14 }
   0xf   :  { %70 = vmatpush.msra.mxu0 %v48_v1  ;;  %203 = vmatpush.msra.mxu2 %v48_v1 }
  0x10   :  { %v82_v8 = vadd.f32 1e-08, %v80_v5  ;;  %107 = vmatpush.msra.mxu1 %v48_v1  ;;  %207 = vmatpush.msra.mxu3 %v48_v1  ;;  %v83_v9 = vadd.f32 1e-08, %v81_v6  ;;  %vm119_vm1 = vcmp.eq.s32.totalorder %v118_v15, 64 }
  0x11   :  { %71 = vmatpush.msra.mxu0 %v47_v4  ;;  %204 = vmatpush.msra.mxu2 %v47_v4 }
  0x12   :  { %215 = vlog2.f32 %v82_v8  ;;  %108 = vmatpush.msra.mxu1 %v47_v4  ;;  %208 = vmatpush.msra.mxu3 %v47_v4 }
  0x13   :  { %72 = vmatpush.msra.mxu0 %v46_v7  ;;  %205 = vmatpush.msra.mxu2 %v46_v7  ;;  %217 = vlog2.f32 %v83_v9 }
  0x14   :  { %196 = vmatmul.msk.f32.vlgmr.msra.gmra.mxu0 %vm50_vm0, %v44_v2  ;;  %197 = vmatmul.msk.f32.vlgmr.msra.gmra.mxu2 %vm50_vm0, %v45_v3 }
  0x15   :  { %109 = vmatpush.msra.mxu1 %v46_v7  ;;  %209 = vmatpush.msra.mxu3 %v46_v7 }
  0x18   :  { %v216_v10 = vpop.eup %215 }
  0x19   :  { %v218_v11 = vpop.eup %217  ;;  %v85_v12 = vmul.f32 0.6931472, %v216_v10 }
  0x1a   :  { %v87_v13 = vmul.f32 0.6931472, %v218_v11 }
  0x1b   :  { %198 = vmatmul.msk.f32.vlgmr.msra.gmra.mxu1 %vm50_vm0, %v85_v12 }
  0x1c   :  { %199 = vmatmul.msk.f32.vlgmr.msra.gmra.mxu3 %vm50_vm0, %v87_v13 }
  0x91   :  { %v74_v16 = vpop.f32.mrf.mxu0 }
  0x92   :  { %v120_v17 = vsel %vm119_vm1, %v74_v16, 0.0 }
  0x93   :  { %122 = vadd.xlane.f32.xlu0 %v120_v17 }
  0x97   :  { %v77_v18 = vpop.f32.mrf.mxu2 }
  0x98   :  { %v121_v19 = vsel %vm119_vm1, %v77_v18, 0.0  ;;  %v111_v26 = vpop.f32.mrf.mxu1 }
  0x99   :  { %v164_v27 = vmul.f32 1.442695, %v111_v26 }
  0x9b   :  { %124 = vadd.xlane.f32.xlu0 %v121_v19 }
  0x9f   :  { %v114_v31 = vpop.f32.mrf.mxu3 }
  0xa0   :  { %v166_v34 = vmul.f32 1.442695, %v114_v31 }
 0x106   :  { %v123_v20 = vpop.xlane.xlu0 %122 }
 0x107   :  { %v200_v21 = vmul.f32 -1.442695, %v123_v20 }
 0x109   :  { %219 = vpow2.f32 %v200_v21 }
 0x10e   :  { %v125_v22 = vpop.xlane.xlu0 %124 }
 0x10f   :  { %v220_v23 = vpop.eup %219  ;;  %v201_v24 = vmul.f32 -1.442695, %v125_v22 }
 0x110   :  { %v132_v25 = vadd.f32 1.0, %v220_v23 }
 0x111   :  { %221 = vpow2.f32 %v201_v24 }
 0x112   :  { %223 = vrcp.f32 %v132_v25  ;;  %v145_v35 = vand.u32 2147483648, %v132_v25  ;;  %v143_v37 = vand.u32 2147483647, %v132_v25  ;;  %vm139_vm3 = vweird.f32 %v132_v25 }
 0x113   :  { %225 = vpow2.f32 %v164_v27 }
 0x114   :  { %v146_v41 = vor.u32 1.1754944e-38, %v145_v35  ;;  %vm144_vm5 = vcmp.eq.f32.partialorder %v143_v37, 8.507059e+37 }
 0x117   :  { %v222_v28 = vpop.eup %221 }
 0x118   :  { %v224_v29 = vpop.eup %223  ;;  %v133_v30 = vadd.f32 1.0, %v222_v28 }
 0x119   :  { %v135_v32 = vmul.f32 %v224_v29, %v132_v25  ;;  %vm140_vm2 = vweird.f32 %v224_v29  ;;  %v226_v38 = vpop.eup %225 }
 0x11a   :  { %227 = vrcp.f32 %v133_v30  ;;  %vm141_vm4 = vmor %vm139_vm3, %vm140_vm2  ;;  %v168_v42 = vsub.f32 %v74_v16, %v226_v38  ;;  %v160_v48 = vand.u32 2147483648, %v133_v30  ;;  %v158_v50 = vand.u32 2147483647, %v133_v30 }
 0x11b   :  { %v136_v33 = vsub.f32 1.0, %v135_v32  ;;  %229 = vpow2.f32 %v166_v34  ;;  %vm154_vm7 = vweird.f32 %v133_v30 }
 0x11c   :  { %v161_v54 = vor.u32 1.1754944e-38, %v160_v48  ;;  %vm159_vm9 = vcmp.eq.f32.partialorder %v158_v50, 8.507059e+37 }
 0x11d   :  { %v137_v36 = vmul.f32 %v224_v29, %v136_v33 }
 0x11f   :  { %v138_v39 = vadd.f32 %v224_v29, %v137_v36 }
 0x120   :  { %v228_v40 = vpop.eup %227 }
 0x121   :  { %v150_v43 = vmul.f32 %v228_v40, %v133_v30  ;;  %v142_v44 = vsel %vm141_vm4, %v224_v29, %v138_v39  ;;  %vm155_vm6 = vweird.f32 %v228_v40  ;;  %v230_v52 = vpop.eup %229 }
 0x122   :  { %v147_v45 = vsel %vm144_vm5, %v146_v41, %v142_v44  ;;  %vm156_vm8 = vmor %vm154_vm7, %vm155_vm6  ;;  %v169_v55 = vsub.f32 %v77_v18, %v230_v52 }
 0x123   :  { %v151_v46 = vsub.f32 1.0, %v150_v43  ;;  %v170_v47 = vmul.f32 %v168_v42, %v147_v45 }
 0x125   :  { %v152_v49 = vmul.f32 %v228_v40, %v151_v46  ;;  %v172_v51 = vadd.f32 %v226_v38, %v170_v47 }
 0x127   :  { %v153_v53 = vadd.f32 %v228_v40, %v152_v49  ;;  %174 = vst [vmem:[#allocation7] sm:$0xff] %v172_v51 }
 0x129   :  { %v157_v56 = vsel %vm156_vm8, %v228_v40, %v153_v53 }
 0x12a   :  { %v162_v57 = vsel %vm159_vm9, %v161_v54, %v157_v56 }
 0x12b   :  { %v171_v58 = vmul.f32 %v169_v55, %v162_v57 }
 0x12d   :  { %v173_v59 = vadd.f32 %v230_v52, %v171_v58 }
 0x12f   :  { %175 = vst [vmem:[#allocation7 + $0x8] sm:$0xff] %v173_v59 }
 0x130   :  { %188 = dma.vmem_to_hbm [thread:$0]  %s181_s1, 256, %s183_s23, [#allocation4], %s310_s17, %s310_s17, %s311_s18  }
 0x131   :  { %307 = dma.done.wait [#allocation4], 256  }
 0x132   :  { %308 = vsyncadd [#allocation4], 4294967040 }
 0x133   :  { %193 = vsyncpa [#allocation3], 1 }
 0x134   :  { %194 = vsyncpa [#allocation6], 1 }
 0x135   :  { %195 = vsyncpa [#allocation4], 1 }

</bundles_post_ra>
